<compile_context>
chip_gen: v5e
topology: v5e:2x2
jax: 0.10.0
libtpu: 0.0.40
codegen_flags: <defaults>
</compile_context>

<pallas_src>
import functools
import math

import jax
import jax.numpy as jnp
from jax.experimental import pallas as pl
from jax.experimental.pallas import tpu as pltpu


_VMEM_LIMIT = 32 * 1024 * 1024  # safe on v5e/v6e (128 MiB phys) and v7x (64 MiB)


# ----------------------------------------------------------------------------
# Pallas kernels
# ----------------------------------------------------------------------------
def _matmul_bias_relu_kernel(x_ref, w_ref, b_ref, o_ref):
    """One row-tile of relu(x @ w + b). Weights/bias are resident blocks."""
    y = jnp.dot(x_ref[...], w_ref[...], preferred_element_type=jnp.float32)
    y = y + b_ref[...]                       # (1, N) broadcast over rows
    o_ref[...] = jnp.maximum(y, 0.0).astype(o_ref.dtype)


def conv_matmul_relu_pallas(x, w, b, *, tm=128):
    """relu(x @ w + b); x:(M,K) w:(K,N) b:(N,). M-tiled, weights resident."""
    M, K = x.shape
    K2, N = w.shape
    assert K == K2
    TM = min(tm, M)
    grid = (pl.cdiv(M, TM),)
    return pl.pallas_call(
        _matmul_bias_relu_kernel,
        out_shape=jax.ShapeDtypeStruct((M, N), jnp.float32),
        grid=grid,
        in_specs=[
            pl.BlockSpec((TM, K), lambda i: (i, 0)),
            pl.BlockSpec((K, N), lambda i: (0, 0)),   # resident
            pl.BlockSpec((1, N), lambda i: (0, 0)),   # resident
        ],
        out_specs=pl.BlockSpec((TM, N), lambda i: (i, 0)),
        compiler_params=pltpu.CompilerParams(
            dimension_semantics=("parallel",),
            vmem_limit_bytes=_VMEM_LIMIT),
    )(x, w, b.reshape(1, N))


def _mlp_heads_sample_kernel(*refs, n_hidden):
    """Fused: MLP hidden layers -> mean/log_std heads -> rsample -> log_qz.

    refs = (h, [w_i, b_i]*n_hidden, w_mu, b_mu, w_ls, b_ls, eps, z_out, logq_out)
    """
    h = refs[0][...]
    pos = 1
    for _ in range(n_hidden):
        w = refs[pos][...]
        b = refs[pos + 1][...]
        pos += 2
        h = jnp.maximum(
            jnp.dot(h, w, preferred_element_type=jnp.float32) + b, 0.0)

    w_mu, b_mu = refs[pos][...], refs[pos + 1][...]
    w_ls, b_ls = refs[pos + 2][...], refs[pos + 3][...]
    eps = refs[pos + 4][...]
    z_ref, logq_ref = refs[pos + 5], refs[pos + 6]

    mean = jnp.dot(h, w_mu, preferred_element_type=jnp.float32) + b_mu
    log_std = jnp.dot(h, w_ls, preferred_element_type=jnp.float32) + b_ls
    std = jnp.exp(log_std)
    z = mean + std * eps                                    # rsample
    # Normal(mean, std).log_prob(z): (z - mean)/std == eps exactly, so use eps
    # directly (cheaper, no divide, robust to std underflow).
    logp = -0.5 * (eps * eps) - log_std - 0.5 * math.log(2.0 * math.pi)
    z_ref[...] = z.astype(z_ref.dtype)
    logq_ref[...] = jnp.sum(logp, axis=-1, keepdims=True).astype(logq_ref.dtype)


def mlp_heads_sample_pallas(h, mlp_params, head_mean, head_log_std, eps, *, tm=256):
    """Single pallas_call for the whole MLP + heads + sample tail.

    h:(M,D0), eps:(M,L) -> z:(M,L), log_qz:(M,1). All weights VMEM-resident.
    """
    M, D0 = h.shape
    L = head_mean[0].shape[1]
    TM = min(tm, M)
    grid = (pl.cdiv(M, TM),)

    inputs = [h]
    in_specs = [pl.BlockSpec((TM, D0), lambda i: (i, 0))]
    for (w, b) in list(mlp_params) + [head_mean, head_log_std]:
        K, N = w.shape
        inputs += [w, b.reshape(1, N)]
        in_specs += [pl.BlockSpec((K, N), lambda i: (0, 0)),
                     pl.BlockSpec((1, N), lambda i: (0, 0))]
    inputs.append(eps)
    in_specs.append(pl.BlockSpec((TM, L), lambda i: (i, 0)))

    kernel = functools.partial(_mlp_heads_sample_kernel, n_hidden=len(mlp_params))
    z, logq = pl.pallas_call(
        kernel,
        out_shape=(jax.ShapeDtypeStruct((M, L), jnp.float32),
                   jax.ShapeDtypeStruct((M, 1), jnp.float32)),
        grid=grid,
        in_specs=in_specs,
        out_specs=(pl.BlockSpec((TM, L), lambda i: (i, 0)),
                   pl.BlockSpec((TM, 1), lambda i: (i, 0))),
        compiler_params=pltpu.CompilerParams(
            dimension_semantics=("parallel",),
            vmem_limit_bytes=_VMEM_LIMIT),
    )(*inputs)
    return z, logq


# ----------------------------------------------------------------------------
# Glue: im2col (data movement only — all matmuls happen in Pallas kernels)
# ----------------------------------------------------------------------------
def im2col(x, k, s, p):
    """x:(N,H,W,C) -> cols:(N,Ho,Wo,k*k*C), patch feature order (kh, kw, c)."""
    xp = jnp.pad(x, ((0, 0), (p, p), (p, p), (0, 0)))
    N, Hp, Wp, C = xp.shape
    Ho = (Hp - k) // s + 1
    Wo = (Wp - k) // s + 1
    patches = []
    for i in range(k):
        for j in range(k):
            patches.append(
                xp[:, i:i + s * (Ho - 1) + 1:s, j:j + s * (Wo - 1) + 1:s, :])
    cols = jnp.stack(patches, axis=3)           # (N, Ho, Wo, k*k, C)
    return cols.reshape(N, Ho, Wo, k * k * C), Ho, Wo


def cnn_output_shape(h, w, kernels, strides, paddings):
    for k, s, p in zip(kernels, strides, paddings):
        h = (h + 2 * p - k) // s + 1
        w = (w + 2 * p - k) // s + 1
    return h, w


# ----------------------------------------------------------------------------
# Parameter init (deterministic, synthetic)
# ----------------------------------------------------------------------------
def init_encoder_params(key, input_channels, channels, kernels,
                        hidden_dims, latent_dim, conv_out_hw):
    params = {"conv": [], "mlp": []}
    n_keys = 2 * len(channels) + 2 * len(hidden_dims) + 4
    keys = iter(jax.random.split(key, n_keys))

    cin = input_channels
    for cout, k in zip(channels, kernels):
        fan_in = k * k * cin
        w = jax.random.normal(next(keys), (k, k, cin, cout), jnp.float32)
        w = w / jnp.sqrt(jnp.float32(fan_in))
        b = 0.01 * jax.random.normal(next(keys), (cout,), jnp.float32)
        # Store matmul form with rows ordered (kh, kw, cin) to match im2col.
        params["conv"].append((w.reshape(k * k * cin, cout), b))
        cin = cout

    out_h, out_w = conv_out_hw
    c_last = channels[-1]
    din = out_h * out_w * c_last
    for li, dout in enumerate(hidden_dims):
        w = jax.random.normal(next(keys), (din, dout), jnp.float32)
        w = w / jnp.sqrt(jnp.float32(din))
        b = 0.01 * jax.random.normal(next(keys), (dout,), jnp.float32)
        if li == 0:
            # Fold the NHWC->NCHW transpose-before-flatten into the first MLP
            # weight: rows are generated in torch's NCHW-flatten order (c,h,w)
            # and permuted once to NHWC flatten order (h,w,c), so the forward
            # pass consumes the NHWC conv output directly (no feature-map
            # transpose / extra HBM round-trip).
            perm = jnp.arange(c_last * out_h * out_w).reshape(
                c_last, out_h, out_w).transpose(1, 2, 0).reshape(-1)
            w = w[perm]
        params["mlp"].append((w, b))
        din = dout

    for name in ("mean", "log_std"):
        w = jax.random.normal(next(keys), (din, latent_dim), jnp.float32)
        w = w / jnp.sqrt(jnp.float32(din))
        b = 0.01 * jax.random.normal(next(keys), (latent_dim,), jnp.float32)
        params[name] = (w, b)
    return params


# ----------------------------------------------------------------------------
# Encoder forward
# ----------------------------------------------------------------------------
def encoder_forward(params, x, eps, kernels, strides, paddings):
    """x: (S,B,C,H,W) NCHW like PyTorch; eps: (S,B,latent_dim) N(0,1) noise."""
    S, B, C, H, W = x.shape
    N = S * B
    # One small NCHW->NHWC transpose of the raw input (a few KiB); activations
    # stay NHWC for the rest of the conv stack.
    h = x.reshape(N, C, H, W).transpose(0, 2, 3, 1)

    # conv_net: Conv2d + ReLU per layer (last_act=True, no batchnorm).
    for (w_mat, b), k, s, p in zip(params["conv"], kernels, strides, paddings):
        cols, Ho, Wo = im2col(h, k, s, p)
        Kdim = cols.shape[-1]
        Cout = w_mat.shape[-1]
        y = conv_matmul_relu_pallas(cols.reshape(N * Ho * Wo, Kdim), w_mat, b)
        h = y.reshape(N, Ho, Wo, Cout)

    # NHWC flatten; the NCHW-order flatten of the PyTorch model is reproduced
    # by the row-permuted first MLP weight (folded at init).
    h_flat = h.reshape(N, -1)

    # Fused MLP + mean/log_std heads + rsample + log_qz (single pallas_call).
    z2, logq2 = mlp_heads_sample_pallas(
        h_flat, params["mlp"], params["mean"], params["log_std"],
        eps.reshape(N, -1))

    latent_dim = z2.shape[-1]
    z = z2.reshape(S, B, latent_dim)
    log_qz = logq2.reshape(S, B)
    return z, log_qz


# ----------------------------------------------------------------------------
# Main
# ----------------------------------------------------------------------------
if __name__ == "__main__":
    S, B = 2, 2
    im_height, im_width = 16, 16
    input_channels = 3
    channels = [8, 16]
    kernels = [4, 4]
    strides = [2, 2]
    paddings = [1, 1]
    hidden_dims = [32]
    latent_dim = 8

    out_h, out_w = cnn_output_shape(im_height, im_width, kernels, strides, paddings)

    root = jax.random.PRNGKey(0)
    k_params, k_x, k_eps = jax.random.split(root, 3)
    params = init_encoder_params(k_params, input_channels, channels, kernels,
                                 hidden_dims, latent_dim, (out_h, out_w))

    x = jax.random.normal(
        k_x, (S, B, input_channels, im_height, im_width), jnp.float32)
    eps = jax.random.normal(k_eps, (S, B, latent_dim), jnp.float32)

    z, log_qz = encoder_forward(params, x, eps, kernels, strides, paddings)
    jax.block_until_ready((z, log_qz))

    assert z.shape == (S, B, latent_dim)
    assert log_qz.shape == (S, B)
    assert bool(jnp.all(jnp.isfinite(z))) and bool(jnp.all(jnp.isfinite(log_qz)))
    print("KERNEL_OK")
</pallas_src>

<mosaic_0001>
module attributes {stable_mosaic.version = 11 : i64} {
  func.func @_matmul_bias_relu_kernel(%arg0: i32, %arg1: memref<128x48xf32, #tpu.memory_space<vmem>>, %arg2: memref<48x8xf32, #tpu.memory_space<vmem>>, %arg3: memref<1x8xf32, #tpu.memory_space<vmem>>, %arg4: memref<128x8xf32, #tpu.memory_space<vmem>>) attributes {dimension_semantics = [#tpu.dimension_semantics<parallel>], iteration_bounds = array<i64: 2>, scalar_prefetch = 0 : i64, scratch_operands = 0 : i64, tpu.core_type = #tpu.core_type<tc>, window_params = [{transform_indices = @transform_0, window_bounds = array<i64: 128, 48>}, {pipeline_mode = #tpu.pipeline_mode<synchronous>, transform_indices = @transform_1, window_bounds = array<i64: 48, 8>}, {pipeline_mode = #tpu.pipeline_mode<synchronous>, transform_indices = @transform_2, window_bounds = array<i64: 1, 8>}, {transform_indices = @transform_3, window_bounds = array<i64: 128, 8>}]} {
    %c0 = arith.constant 0 : index
    %c0_0 = arith.constant 0 : index
    %0 = vector.load %arg1[%c0, %c0_0] : memref<128x48xf32, #tpu.memory_space<vmem>>, vector<128x48xf32>
    %c0_1 = arith.constant 0 : index
    %c0_2 = arith.constant 0 : index
    %1 = vector.load %arg2[%c0_1, %c0_2] : memref<48x8xf32, #tpu.memory_space<vmem>>, vector<48x8xf32>
    %cst = arith.constant dense<0.000000e+00> : vector<128x8xf32>
    %2 = tpu.matmul %0, %1, %cst {dimension_numbers = #tpu.dot_dimension_numbers<[1], [0], [0], [1], [0, 0, 1, 1], [], []>} : vector<128x48xf32>, vector<48x8xf32>, vector<128x8xf32> -> vector<128x8xf32>
    %c0_3 = arith.constant 0 : index
    %c0_4 = arith.constant 0 : index
    %3 = vector.load %arg3[%c0_3, %c0_4] : memref<1x8xf32, #tpu.memory_space<vmem>>, vector<1x8xf32>
    %4 = vector.broadcast %3 : vector<1x8xf32> to vector<128x8xf32>
    %5 = arith.addf %2, %4 : vector<128x8xf32>
    %cst_5 = arith.constant 0.000000e+00 : f32
    %6 = vector.broadcast %cst_5 : f32 to vector<128x8xf32>
    %7 = arith.maximumf %5, %6 : vector<128x8xf32>
    %c0_6 = arith.constant 0 : index
    %c0_7 = arith.constant 0 : index
    %8 = vector.load %arg4[%c0_6, %c0_7] : memref<128x8xf32, #tpu.memory_space<vmem>>, vector<128x8xf32>
    tpu.vector_store %arg4[%c0_6, %c0_7], %7 {strides = array<i32>} : memref<128x8xf32, #tpu.memory_space<vmem>>, vector<128x8xf32>,
    return
  }
  func.func @transform_0(%arg0: i32) -> (i32, i32) {
    %c0_i32 = arith.constant 0 : i32
    %c0_i32_0 = arith.constant 0 : i32
    return %arg0, %c0_i32 : i32, i32
  }
  func.func @transform_1(%arg0: i32) -> (i32, i32) {
    %c0_i32 = arith.constant 0 : i32
    %c0_i32_0 = arith.constant 0 : i32
    %c0_i32_1 = arith.constant 0 : i32
    return %c0_i32, %c0_i32_0 : i32, i32
  }
  func.func @transform_2(%arg0: i32) -> (i32, i32) {
    %c0_i32 = arith.constant 0 : i32
    %c0_i32_0 = arith.constant 0 : i32
    %c0_i32_1 = arith.constant 0 : i32
    return %c0_i32, %c0_i32_0 : i32, i32
  }
  func.func @transform_3(%arg0: i32) -> (i32, i32) {
    %c0_i32 = arith.constant 0 : i32
    %c0_i32_0 = arith.constant 0 : i32
    return %arg0, %c0_i32 : i32, i32
  }
}

</mosaic_0001>

<bundles_post_ra>
// kernel: tpu_custom_call.1
= control target key start
LH: loop header
LB: loop body
LE: loop exit
PB: predicated region body
PF: predicated region fallthrough
CT: control target
= control target key end

     0   :  { %s485_s12 = smov 0   ;;  %s598_s0 = inlined_call_operand.vmem [shape: f32[256,48], index: 0, kind: input, shape index: {}]   ;;  %s599_s1 = inlined_call_operand.vmem [shape: f32[48,8], index: 1, kind: input, shape index: {}]   ;;  %s600_s2 = inlined_call_operand.vmem [shape: f32[1,8], index: 2, kind: input, shape index: {}]   ;;  %s601_s3 = inlined_call_operand.vmem [shape: f32[256,8], index: 3, kind: output, shape index: {}]  }
   0x1 LB: > { %s403_s13 = sadd.s32 4294967295, %s463_s12   ;;  %p407_p0 = scmp.ge.s32.totalorder %s463_s12, 1  ;;  %s463_s12 = sphi %s485_s12, %s13_s12  }
   0x2   : > { %p138_p1 = scmp.lt.s32.totalorder %s463_s12, 3 }
   0x4   : > { %p139_p2 = pnand %p407_p0, %p138_p1 }
   0x5   : > { %s408_s18 = sshll.u32 (!%p139_p2), %s403_s13, 4 }
   0x6   : > { %142 = sbr.rel (%p139_p2) target bundleno = 185 (0xb9), region = 32  ;;  %p163_p3 = scmp.lt.s32.totalorder (!%p139_p2), %s408_s18, 31 }
   0xb   : > { %v195_v0 = vld [vmem:[%s599_s1 + $0x28] sm:$0xff]  ;;  %v194_v1 = vld [vmem:[%s599_s1 + $0x20] sm:$0xff]  ;;  %v193_v2 = vld [vmem:[%s599_s1 + $0x18] sm:$0xff]  ;;  %s603_s18 = smov (!%p163_p3, %s408_s18), 31  ;;  %vm200_vm0 = vcmask 392192   ;;  %vm330_vm1 = vcmask 64512  }
   0xc   : > { %431 = vmatpush.msra.mxu2 %v195_v0  ;;  %432 = vmatpush.msra.mxu3 %v195_v0  ;;  %v192_v3 = vld [vmem:[%s599_s1 + $0x10] sm:$0xff]  ;;  %s409_s23 = sshll.u32 %s603_s18, 3  ;;  %v191_v4 = vld [vmem:[%s599_s1 + $0x8] sm:$0xff]  ;;  %v190_v5 = vld [vmem:[%s599_s1] sm:$0xff] }
   0xd   : > { %259 = vmatpush.msra.mxu0 %v195_v0  ;;  %430 = vmatpush.msra.mxu1 %v195_v0  ;;  %s516_s28 = scalar_lea.vmem %s598_s0, %s409_s23  ;;  %v456_v22 = vld [vmem:[%s600_s2] ss:$0 sm:$0xff]  ;;  %s561_s8 = scalar_lea.vmem %s601_s3, %s409_s23 }
   0xe   : > { %434 = vmatpush.msra.mxu2 %v194_v1  ;;  %435 = vmatpush.msra.mxu3 %v194_v1  ;;  %v182_v6 = vld [vmem:[%s516_s28 + $0x40] sm:$0xff]  ;;  %v183_v10 = vld [vmem:[%s516_s28 + $0x48] sm:$0xff]  ;;  %v184_v14 = vld [vmem:[%s516_s28 + $0x50] sm:$0xff] }
   0xf   : > { %260 = vmatpush.msra.mxu0 %v194_v1  ;;  %433 = vmatpush.msra.mxu1 %v194_v1  ;;  %v186_v7 = vld [vmem:[%s516_s28 + $0x60] sm:$0xff]  ;;  %v187_v11 = vld [vmem:[%s516_s28 + $0x68] sm:$0xff]  ;;  %v188_v15 = vld [vmem:[%s516_s28 + $0x70] sm:$0xff] }
  0x10   : > { %437 = vmatpush.msra.mxu2 %v193_v2  ;;  %438 = vmatpush.msra.mxu3 %v193_v2  ;;  %v174_v8 = vld [vmem:[%s516_s28] sm:$0xff]  ;;  %v175_v12 = vld [vmem:[%s516_s28 + $0x8] sm:$0xff]  ;;  %v176_v16 = vld [vmem:[%s516_s28 + $0x10] sm:$0xff] }
  0x11   : > { %261 = vmatpush.msra.mxu0 %v193_v2  ;;  %436 = vmatpush.msra.mxu1 %v193_v2  ;;  %v178_v9 = vld [vmem:[%s516_s28 + $0x20] sm:$0xff]  ;;  %v179_v13 = vld [vmem:[%s516_s28 + $0x28] sm:$0xff]  ;;  %v180_v17 = vld [vmem:[%s516_s28 + $0x30] sm:$0xff] }
  0x12   : > { %440 = vmatpush.msra.mxu2 %v192_v3  ;;  %441 = vmatpush.msra.mxu3 %v192_v3  ;;  %v185_v18 = vld [vmem:[%s516_s28 + $0x58] sm:$0xff] }
  0x13   : > { %262 = vmatpush.msra.mxu0 %v192_v3  ;;  %439 = vmatpush.msra.mxu1 %v192_v3  ;;  %v189_v19 = vld [vmem:[%s516_s28 + $0x78] sm:$0xff] }
  0x14   : > { %443 = vmatpush.msra.mxu2 %v191_v4  ;;  %444 = vmatpush.msra.mxu3 %v191_v4  ;;  %v177_v20 = vld [vmem:[%s516_s28 + $0x18] sm:$0xff] }
  0x15   : > { %263 = vmatpush.msra.mxu0 %v191_v4  ;;  %442 = vmatpush.msra.mxu1 %v191_v4  ;;  %v181_v21 = vld [vmem:[%s516_s28 + $0x38] sm:$0xff] }
  0x16   : > { %446 = vmatpush.msra.mxu2 %v190_v5  ;;  %447 = vmatpush.msra.mxu3 %v190_v5 }
  0x17   : > { %420 = vmatmul.msk.f32.vlgmr.msra.gmra.mxu2 %vm200_vm0, %v182_v6  ;;  %424 = vmatmul.msk.f32.vlgmr.msra.gmra.mxu3 %vm200_vm0, %v186_v7 }
  0x18   : > { %264 = vmatpush.msra.mxu0 %v190_v5  ;;  %445 = vmatpush.msra.mxu1 %v190_v5 }
  0x19   : > { %412 = vmatmul.msk.f32.vlgmr.msra.gmra.mxu0 %vm200_vm0, %v174_v8  ;;  %416 = vmatmul.msk.f32.vlgmr.msra.gmra.mxu1 %vm200_vm0, %v178_v9 }
  0x1f   : > { %421 = vmatmul.msk.f32.gmra.mxu2 %vm200_vm0, %v183_v10  ;;  %425 = vmatmul.msk.f32.gmra.mxu3 %vm200_vm0, %v187_v11 }
  0x21   : > { %413 = vmatmul.msk.f32.gmra.mxu0 %vm200_vm0, %v175_v12  ;;  %417 = vmatmul.msk.f32.gmra.mxu1 %vm200_vm0, %v179_v13 }
  0x27   : > { %422 = vmatmul.msk.f32.gmra.mxu2 %vm200_vm0, %v184_v14  ;;  %426 = vmatmul.msk.f32.gmra.mxu3 %vm200_vm0, %v188_v15 }
  0x29   : > { %414 = vmatmul.msk.f32.gmra.mxu0 %vm200_vm0, %v176_v16  ;;  %418 = vmatmul.msk.f32.gmra.mxu1 %vm200_vm0, %v180_v17 }
  0x2f   : > { %423 = vmatmul.msk.f32.gmra.mxu2 %vm200_vm0, %v185_v18  ;;  %427 = vmatmul.msk.f32.gmra.mxu3 %vm200_vm0, %v189_v19 }
  0x31   : > { %415 = vmatmul.msk.f32.gmra.mxu0 %vm200_vm0, %v177_v20  ;;  %419 = vmatmul.msk.f32.gmra.mxu1 %vm200_vm0, %v181_v21 }
  0x96   : > { %v266_v23 = vpop.f32.mrf.mxu0  ;;  %v278_v24 = vpop.f32.mrf.mxu1 }
  0x97   : > { %v267_v25 = vadd.f32 %v456_v22, %v266_v23  ;;  %v279_v26 = vadd.f32 %v456_v22, %v278_v24 }
  0x99   : > { %v314_v27 = vmax.f32 %v267_v25, 0.0  ;;  %v318_v28 = vmax.f32 %v279_v26, 0.0 }
  0x9a   : > { %v290_v29 = vpop.f32.mrf.mxu2  ;;  %v302_v30 = vpop.f32.mrf.mxu3 }
  0x9b   : > { %331 = vst.msk [vmem:[%s561_s8] sm:$0xff] %vm330_vm1, %v314_v27  ;;  %v291_v31 = vadd.f32 %v456_v22, %v290_v29  ;;  %v303_v32 = vadd.f32 %v456_v22, %v302_v30 }
  0x9c   : > { %335 = vst.msk [vmem:[%s561_s8 + $0x20] sm:$0xff] %vm330_vm1, %v318_v28 }
  0x9d   : > { %v322_v33 = vmax.f32 %v291_v31, 0.0  ;;  %v326_v34 = vmax.f32 %v303_v32, 0.0 }
  0x9e   : > { %v269_v35 = vpop.f32.mrf.mxu0  ;;  %v281_v36 = vpop.f32.mrf.mxu1 }
  0x9f   : > { %339 = vst.msk [vmem:[%s561_s8 + $0x40] sm:$0xff] %vm330_vm1, %v322_v33  ;;  %v270_v37 = vadd.f32 %v456_v22, %v269_v35  ;;  %v282_v38 = vadd.f32 %v456_v22, %v281_v36 }
  0xa0   : > { %343 = vst.msk [vmem:[%s561_s8 + $0x60] sm:$0xff] %vm330_vm1, %v326_v34 }
  0xa1   : > { %v315_v39 = vmax.f32 %v270_v37, 0.0  ;;  %v319_v40 = vmax.f32 %v282_v38, 0.0 }
  0xa2   : > { %v293_v41 = vpop.f32.mrf.mxu2  ;;  %v305_v42 = vpop.f32.mrf.mxu3 }
  0xa3   : > { %332 = vst.msk [vmem:[%s561_s8 + $0x8] sm:$0xff] %vm330_vm1, %v315_v39  ;;  %v294_v43 = vadd.f32 %v456_v22, %v293_v41  ;;  %v306_v44 = vadd.f32 %v456_v22, %v305_v42 }
  0xa4   : > { %336 = vst.msk [vmem:[%s561_s8 + $0x28] sm:$0xff] %vm330_vm1, %v319_v40 }
  0xa5   : > { %v323_v45 = vmax.f32 %v294_v43, 0.0  ;;  %v327_v46 = vmax.f32 %v306_v44, 0.0 }
  0xa6   : > { %v272_v47 = vpop.f32.mrf.mxu0  ;;  %v284_v48 = vpop.f32.mrf.mxu1 }
  0xa7   : > { %340 = vst.msk [vmem:[%s561_s8 + $0x48] sm:$0xff] %vm330_vm1, %v323_v45  ;;  %v273_v49 = vadd.f32 %v456_v22, %v272_v47  ;;  %v285_v50 = vadd.f32 %v456_v22, %v284_v48 }
  0xa8   : > { %344 = vst.msk [vmem:[%s561_s8 + $0x68] sm:$0xff] %vm330_vm1, %v327_v46 }
  0xa9   : > { %v316_v51 = vmax.f32 %v273_v49, 0.0  ;;  %v320_v52 = vmax.f32 %v285_v50, 0.0 }
  0xaa   : > { %v296_v53 = vpop.f32.mrf.mxu2  ;;  %v308_v54 = vpop.f32.mrf.mxu3 }
  0xab   : > { %333 = vst.msk [vmem:[%s561_s8 + $0x10] sm:$0xff] %vm330_vm1, %v316_v51  ;;  %v297_v55 = vadd.f32 %v456_v22, %v296_v53  ;;  %v309_v56 = vadd.f32 %v456_v22, %v308_v54 }
  0xac   : > { %337 = vst.msk [vmem:[%s561_s8 + $0x30] sm:$0xff] %vm330_vm1, %v320_v52 }
  0xad   : > { %v324_v57 = vmax.f32 %v297_v55, 0.0  ;;  %v328_v58 = vmax.f32 %v309_v56, 0.0 }
  0xae   : > { %v275_v59 = vpop.f32.mrf.mxu0  ;;  %v287_v60 = vpop.f32.mrf.mxu1 }
  0xaf   : > { %341 = vst.msk [vmem:[%s561_s8 + $0x50] sm:$0xff] %vm330_vm1, %v324_v57  ;;  %v276_v61 = vadd.f32 %v456_v22, %v275_v59  ;;  %v288_v62 = vadd.f32 %v456_v22, %v287_v60 }
  0xb0   : > { %345 = vst.msk [vmem:[%s561_s8 + $0x70] sm:$0xff] %vm330_vm1, %v328_v58 }
  0xb1   : > { %v317_v63 = vmax.f32 %v276_v61, 0.0  ;;  %v321_v0 = vmax.f32 %v288_v62, 0.0 }
  0xb2   : > { %v299_v1 = vpop.f32.mrf.mxu2  ;;  %v311_v2 = vpop.f32.mrf.mxu3 }
  0xb3   : > { %334 = vst.msk [vmem:[%s561_s8 + $0x18] sm:$0xff] %vm330_vm1, %v317_v63  ;;  %v300_v3 = vadd.f32 %v456_v22, %v299_v1  ;;  %v312_v4 = vadd.f32 %v456_v22, %v311_v2 }
  0xb4   : > { %338 = vst.msk [vmem:[%s561_s8 + $0x38] sm:$0xff] %vm330_vm1, %v321_v0 }
  0xb5   : > { %v325_v5 = vmax.f32 %v300_v3, 0.0  ;;  %v329_v6 = vmax.f32 %v312_v4, 0.0 }
  0xb7   : > { %342 = vst.msk [vmem:[%s561_s8 + $0x58] sm:$0xff] %vm330_vm1, %v325_v5 }
  0xb8   : > { %346 = vst.msk [vmem:[%s561_s8 + $0x78] sm:$0xff] %vm330_vm1, %v329_v6 }
  0xb9 PF: > { %s13_s12 = sadd.s32 1, %s463_s12  }
  0xba   : > { %p10_p4 = scmp.ge.s32.totalorder %s13_s12, 4  }
  0xbc   :  { %12 = sbr.rel (!%p10_p4) target bundleno = 1 (0x1), region = 62 }

</bundles_post_ra>
